<compile_context>
chip_gen: v6e
topology: v6e:2x2x1
jax: 0.10.0
libtpu: 0.0.40
codegen_flags: <defaults>
</compile_context>

<pallas_src>
import functools

import jax
import jax.numpy as jnp
from jax import lax
from jax.experimental import pallas as pl
from jax.experimental.pallas import tpu as pltpu


def _sample_iou_kernel(x_ref, t_ref, o_ref, *, num_classes, dmin, R, TS,
                       has_sentinel, need_row_mask, rs):
    """One (TS, LW) pixel tile of one (batch, split) pair.

    x_ref: (C, TS, LW)   logits tile, incoming dtype (no upfront f32 cast)
    t_ref: (TS, LW)      targets tile, incoming integer dtype
    o_ref: (8, 128) f32  resident accumulator block; row 0, lanes 0..3 hold
        [sum keep*pred*tgt, sum keep*(pred+tgt), sum dmin pred, count dmin]
    """
    s = pl.program_id(1)
    i = pl.program_id(2)

    @pl.when(i == 0)
    def _init():
        o_ref[...] = jnp.zeros_like(o_ref)

    t = t_ref[...]                                   # (TS, LW) int

    # argmax over the class axis: unrolled strict-greater compare/select chain
    # (keeps the first maximal index, matching torch.argmax), loading one
    # class slice lazily per step in the incoming dtype (bf16 stays bf16).
    m = x_ref[0]                                     # (TS, LW)
    pred = jnp.zeros(m.shape, jnp.float32)
    for c in range(1, num_classes):
        xc = x_ref[c]
        gt = xc > m
        m = jnp.where(gt, xc, m)
        pred = jnp.where(gt, jnp.float32(c), pred)

    is_dmin = t == dmin
    if has_sentinel:
        # Padded pixels carry the sentinel -1: excluded from both keep & dmin.
        keep = jnp.logical_and(t >= 0, jnp.logical_not(is_dmin))
    else:
        keep = jnp.logical_not(is_dmin)
    dsel = is_dmin

    if need_row_mask:
        # Rows whose global sublane index falls past R are padding created by
        # the TS tiling (or by the 2-way core split overshoot); mask them.
        b = s * rs + i
        row = b * TS + lax.broadcasted_iota(jnp.int32, (TS, 1), 0)
        valid = row < R
        keep = jnp.logical_and(keep, valid)
        dsel = jnp.logical_and(dsel, valid)

    keepf = keep.astype(jnp.float32)
    dself = dsel.astype(jnp.float32)
    tgtf = t.astype(jnp.float32)

    def _rsum(v):  # (TS, LW) -> (1, 1): lane then sublane reduction (XLU)
        return jnp.sum(jnp.sum(v, axis=1, keepdims=True), axis=0, keepdims=True)

    o_ref[0:1, 0:1] += _rsum(keepf * pred * tgtf)    # intersection (non-dmin)
    o_ref[0:1, 1:2] += _rsum(keepf * (pred + tgtf))  # total        (non-dmin)
    o_ref[0:1, 2:3] += _rsum(dself * pred)           # sum of pred on dmin px
    o_ref[0:1, 3:4] += _rsum(dself)                  # count of dmin pixels


def sample_iou_loss(logits_nchw, targets_nhw, *, smooth=1.0, sampling=0.5,
                    dmin=30, lane_width=512, tile_pixels=32768):
    """Pallas implementation of SampleIoULoss.forward."""
    N, C, H, W = logits_nchw.shape
    HW = H * W

    # ---- pixel layout: (N, C, R, LW), LW a multiple of 128 dividing HWp ----
    HWp = pl.cdiv(HW, 128) * 128
    LW = max(128, (min(lane_width, HWp) // 128) * 128)
    while HWp % LW != 0:
        LW -= 128
    R = HWp // LW

    TS = max(1, min(R, tile_pixels // LW))
    if TS >= 8:
        TS = (TS // 8) * 8          # multiple of 8 for the sublane block dim
    else:
        TS = R                      # small case: block equals the full dim
    grid_r = pl.cdiv(R, TS)

    # Use both v7x TensorCores for single-image calls by splitting the pixel
    # block range into two "parallel" halves, each with its own output row.
    S = 2 if (N == 1 and grid_r >= 2) else 1
    rs = pl.cdiv(grid_r, S)

    x = logits_nchw.reshape(N, C, HW)
    t = targets_nhw.reshape(N, HW)          # keep narrow incoming int dtype
    has_sentinel = HWp != HW
    if has_sentinel:
        # TODO(synk): ragged H*W needs a one-off pad copy so the (N,C,R,LW)
        # view is a free reshape; padded targets use a -1 sentinel.
        if not jnp.issubdtype(t.dtype, jnp.signedinteger):
            t = t.astype(jnp.int32)
        x = jnp.pad(x, ((0, 0), (0, 0), (0, HWp - HW)))
        t = jnp.pad(t, ((0, 0), (0, HWp - HW)), constant_values=-1)
    x = x.reshape(N, C, R, LW)
    t = t.reshape(N, R, LW)

    need_row_mask = (grid_r * TS != R) or (S > 1)

    if S == 1:
        bidx = lambda s, i: i
    else:
        bidx = lambda s, i: jnp.minimum(s * rs + i, grid_r - 1)

    kernel = functools.partial(
        _sample_iou_kernel, num_classes=C, dmin=dmin, R=R, TS=TS,
        has_sentinel=has_sentinel, need_row_mask=need_row_mask, rs=rs)

    cost = pl.CostEstimate(
        flops=int(N * HWp * (3 * (C - 1) + 12)),
        transcendentals=0,
        bytes_accessed=int(N * C * HWp * x.dtype.itemsize
                           + N * HWp * t.dtype.itemsize
                           + N * S * 8 * 128 * 4))

    acc = pl.pallas_call(
        kernel,
        out_shape=jax.ShapeDtypeStruct((N, S, 8, 128), jnp.float32),
        grid=(N, S, rs),
        in_specs=[
            pl.BlockSpec((None, C, TS, LW),
                         lambda n, s, i: (n, 0, bidx(s, i), 0)),
            pl.BlockSpec((None, TS, LW),
                         lambda n, s, i: (n, bidx(s, i), 0)),
        ],
        out_specs=pl.BlockSpec((None, None, 8, 128),
                               lambda n, s, i: (n, s, 0, 0)),
        compiler_params=pltpu.CompilerParams(
            dimension_semantics=("parallel", "parallel", "arbitrary")),
        cost_estimate=cost,
    )(x, t)

    # Tiny final reductions + sampling/IoU arithmetic in plain JAX.
    sums = jnp.sum(acc[:, :, 0, 0:4], axis=(0, 1))           # (4,)
    inter_other, total_other, pred_dmin_sum, n_dmin = (
        sums[0], sums[1], sums[2], sums[3])

    cap = jnp.float32(int(200 * 200 * sampling * int(N)))
    samples = jnp.minimum(n_dmin, cap)
    # Fraction of dmin pixels kept: 1.0 when all are kept (deterministic case);
    # otherwise an expectation-preserving substitute for random.sample.
    frac = jnp.where(n_dmin > 0, samples / jnp.maximum(n_dmin, 1.0), 0.0)
    sampled_pred = frac * pred_dmin_sum

    inter = inter_other + dmin * sampled_pred
    total = total_other + sampled_pred + dmin * samples
    union = total - inter
    iou = (inter + smooth) / (union + smooth)
    return 1.0 - iou


def _reference_loss(logits_nchw, targets_nhw, *, smooth=1.0, sampling=0.5,
                    dmin=30):
    """Pure-JAX reference mirroring the PyTorch module (deterministic branch)."""
    N = logits_nchw.shape[0]
    pred = jnp.argmax(logits_nchw, axis=1).reshape(-1).astype(jnp.float32)
    tgt = targets_nhw.reshape(-1).astype(jnp.float32)
    is_dmin = tgt == jnp.float32(dmin)
    keep = jnp.logical_not(is_dmin).astype(jnp.float32)
    dself = is_dmin.astype(jnp.float32)

    n_dmin = jnp.sum(dself)
    cap = jnp.float32(int(200 * 200 * sampling * int(N)))
    samples = jnp.minimum(n_dmin, cap)
    frac = jnp.where(n_dmin > 0, samples / jnp.maximum(n_dmin, 1.0), 0.0)

    pred_dmin_sum = jnp.sum(dself * pred)
    inter = jnp.sum(keep * pred * tgt) + dmin * frac * pred_dmin_sum
    total = jnp.sum(keep * (pred + tgt)) + frac * pred_dmin_sum + dmin * samples
    union = total - inter
    return 1.0 - (inter + smooth) / (union + smooth)


if __name__ == "__main__":
    key = jax.random.PRNGKey(0)
    k1, k2, k3, k4, k5, k6, k7, k8 = jax.random.split(key, 8)

    # Case 1: module defaults (dmin=30 never appears -> all pixels kept).
    N, C, H, W = 2, 4, 16, 16
    logits = jax.random.normal(k1, (N, C, H, W), dtype=jnp.float32)
    targets = jax.random.randint(k2, (N, H, W), 0, C, dtype=jnp.int32)
    loss = jax.block_until_ready(
        sample_iou_loss(logits, targets, smooth=1.0, sampling=0.5, dmin=30))
    ref = _reference_loss(logits, targets, smooth=1.0, sampling=0.5, dmin=30)
    assert jnp.allclose(loss, ref, rtol=1e-5, atol=1e-5), (loss, ref)

    # Case 1b: same shapes with bf16 logits (native-dtype compare chain).
    logits_bf = logits.astype(jnp.bfloat16)
    loss_bf = jax.block_until_ready(
        sample_iou_loss(logits_bf, targets, smooth=1.0, sampling=0.5, dmin=30))
    ref_bf = _reference_loss(logits_bf, targets, smooth=1.0, sampling=0.5,
                             dmin=30)
    assert jnp.allclose(loss_bf, ref_bf, rtol=1e-5, atol=1e-5), (loss_bf, ref_bf)

    # Case 2: dmin present + ragged H*W (sentinel-padded pixel tail).
    N2, C2, H2, W2 = 2, 4, 10, 30
    logits2 = jax.random.normal(k3, (N2, C2, H2, W2), dtype=jnp.float32)
    targets2 = jax.random.randint(k4, (N2, H2, W2), 0, C2, dtype=jnp.int32)
    loss2 = jax.block_until_ready(
        sample_iou_loss(logits2, targets2, smooth=1.0, sampling=0.5, dmin=2))
    ref2 = _reference_loss(logits2, targets2, smooth=1.0, sampling=0.5, dmin=2)
    assert jnp.allclose(loss2, ref2, rtol=1e-5, atol=1e-5), (loss2, ref2)

    # Case 3: N == 1 with several pixel blocks -> 2-way core split path.
    N3, C3, H3, W3 = 1, 4, 32, 64
    logits3 = jax.random.normal(k5, (N3, C3, H3, W3), dtype=jnp.float32)
    targets3 = jax.random.randint(k6, (N3, H3, W3), 0, C3, dtype=jnp.int32)
    loss3 = jax.block_until_ready(
        sample_iou_loss(logits3, targets3, smooth=1.0, sampling=0.5, dmin=1,
                        lane_width=128, tile_pixels=1024))
    ref3 = _reference_loss(logits3, targets3, smooth=1.0, sampling=0.5, dmin=1)
    assert jnp.allclose(loss3, ref3, rtol=1e-5, atol=1e-5), (loss3, ref3)

    # Case 4: ragged sublane-row tiling (R not a multiple of TS) -> row mask.
    N4, C4, H4, W4 = 2, 3, 24, 64
    logits4 = jax.random.normal(k7, (N4, C4, H4, W4), dtype=jnp.float32)
    targets4 = jax.random.randint(k8, (N4, H4, W4), 0, C4, dtype=jnp.int32)
    loss4 = jax.block_until_ready(
        sample_iou_loss(logits4, targets4, smooth=1.0, sampling=0.5, dmin=1,
                        lane_width=128, tile_pixels=1024))
    ref4 = _reference_loss(logits4, targets4, smooth=1.0, sampling=0.5, dmin=1)
    assert jnp.allclose(loss4, ref4, rtol=1e-5, atol=1e-5), (loss4, ref4)

    print("KERNEL_OK")
</pallas_src>

<mosaic_0001>
module attributes {stable_mosaic.version = 11 : i64} {
  func.func @_sample_iou_kernel(%arg0: i32, %arg1: i32, %arg2: i32, %arg3: memref<1x4x1x256xf32, #tpu.memory_space<vmem>>, %arg4: memref<1x1x256xi32, #tpu.memory_space<vmem>>, %arg5: memref<1x1x8x128xf32, #tpu.memory_space<vmem>>) attributes {dimension_semantics = [#tpu.dimension_semantics<parallel>, #tpu.dimension_semantics<parallel>, #tpu.dimension_semantics<arbitrary>], iteration_bounds = array<i64: 2, 1, 1>, scalar_prefetch = 0 : i64, scratch_operands = 0 : i64, tpu.core_type = #tpu.core_type<tc>, window_params = [{transform_indices = @transform_0, window_bounds = array<i64: 1, 4, 1, 256>}, {transform_indices = @transform_1, window_bounds = array<i64: 1, 1, 256>}, {transform_indices = @transform_2, window_bounds = array<i64: 1, 1, 8, 128>}]} {
    %c0_i32 = arith.constant 0 : i32
    %0 = arith.cmpi eq, %arg2, %c0_i32 : i32
    %1 = arith.extui %0 : i1 to i32
    %c0_i32_0 = arith.constant 0 : i32
    %2 = arith.cmpi ne, %1, %c0_i32_0 : i32
    scf.if %2 {
      %cst_60 = arith.constant 0.000000e+00 : f32
      %78 = vector.broadcast %cst_60 : f32 to vector<8x128xf32>
      %c0_61 = arith.constant 0 : index
      %c0_62 = arith.constant 0 : index
      %c0_63 = arith.constant 0 : index
      %c0_64 = arith.constant 0 : index
      %79 = vector.load %arg5[%c0_61, %c0_62, %c0_63, %c0_64] : memref<1x1x8x128xf32, #tpu.memory_space<vmem>>, vector<1x1x8x128xf32>
      %80 = vector.shape_cast %79 : vector<1x1x8x128xf32> to vector<8x128xf32>
      %81 = vector.shape_cast %78 : vector<8x128xf32> to vector<1x1x8x128xf32>
      tpu.vector_store %arg5[%c0_61, %c0_62, %c0_63, %c0_64], %81 {strides = array<i32>} : memref<1x1x8x128xf32, #tpu.memory_space<vmem>>, vector<1x1x8x128xf32>,
    } else {
    }
    %c0 = arith.constant 0 : index
    %c0_1 = arith.constant 0 : index
    %c0_2 = arith.constant 0 : index
    %3 = vector.load %arg4[%c0, %c0_1, %c0_2] : memref<1x1x256xi32, #tpu.memory_space<vmem>>, vector<1x1x256xi32>
    %4 = vector.shape_cast %3 : vector<1x1x256xi32> to vector<1x256xi32>
    %c0_3 = arith.constant 0 : index
    %c0_4 = arith.constant 0 : index
    %c0_5 = arith.constant 0 : index
    %c0_6 = arith.constant 0 : index
    %5 = vector.load %arg3[%c0_3, %c0_4, %c0_5, %c0_6] : memref<1x4x1x256xf32, #tpu.memory_space<vmem>>, vector<1x1x1x256xf32>
    %6 = vector.shape_cast %5 : vector<1x1x1x256xf32> to vector<1x256xf32>
    %cst = arith.constant 0.000000e+00 : f32
    %7 = vector.broadcast %cst : f32 to vector<1x256xf32>
    %c0_7 = arith.constant 0 : index
    %c1 = arith.constant 1 : index
    %c0_8 = arith.constant 0 : index
    %c0_9 = arith.constant 0 : index
    %8 = vector.load %arg3[%c0_7, %c1, %c0_8, %c0_9] : memref<1x4x1x256xf32, #tpu.memory_space<vmem>>, vector<1x1x1x256xf32>
    %9 = vector.shape_cast %8 : vector<1x1x1x256xf32> to vector<1x256xf32>
    %10 = arith.cmpf ogt, %9, %6 : vector<1x256xf32>
    %11 = arith.select %10, %9, %6 : vector<1x256xi1>, vector<1x256xf32>
    %cst_10 = arith.constant 1.000000e+00 : f32
    %12 = vector.broadcast %cst_10 : f32 to vector<1x256xf32>
    %13 = arith.select %10, %12, %7 : vector<1x256xi1>, vector<1x256xf32>
    %c0_11 = arith.constant 0 : index
    %c2 = arith.constant 2 : index
    %c0_12 = arith.constant 0 : index
    %c0_13 = arith.constant 0 : index
    %14 = vector.load %arg3[%c0_11, %c2, %c0_12, %c0_13] : memref<1x4x1x256xf32, #tpu.memory_space<vmem>>, vector<1x1x1x256xf32>
    %15 = vector.shape_cast %14 : vector<1x1x1x256xf32> to vector<1x256xf32>
    %16 = arith.cmpf ogt, %15, %11 : vector<1x256xf32>
    %17 = arith.select %16, %15, %11 : vector<1x256xi1>, vector<1x256xf32>
    %cst_14 = arith.constant 2.000000e+00 : f32
    %18 = vector.broadcast %cst_14 : f32 to vector<1x256xf32>
    %19 = arith.select %16, %18, %13 : vector<1x256xi1>, vector<1x256xf32>
    %c0_15 = arith.constant 0 : index
    %c3 = arith.constant 3 : index
    %c0_16 = arith.constant 0 : index
    %c0_17 = arith.constant 0 : index
    %20 = vector.load %arg3[%c0_15, %c3, %c0_16, %c0_17] : memref<1x4x1x256xf32, #tpu.memory_space<vmem>>, vector<1x1x1x256xf32>
    %21 = vector.shape_cast %20 : vector<1x1x1x256xf32> to vector<1x256xf32>
    %22 = arith.cmpf ogt, %21, %17 : vector<1x256xf32>
    %cst_18 = arith.constant 3.000000e+00 : f32
    %23 = vector.broadcast %cst_18 : f32 to vector<1x256xf32>
    %24 = arith.select %22, %23, %19 : vector<1x256xi1>, vector<1x256xf32>
    %c30_i32 = arith.constant 30 : i32
    %25 = vector.broadcast %c30_i32 : i32 to vector<1x256xi32>
    %26 = arith.cmpi eq, %4, %25 : vector<1x256xi32>
    %cst_19 = arith.constant dense<true> : vector<1x256xi1>
    %27 = arith.xori %26, %cst_19 : vector<1x256xi1>
    %28 = arith.extui %27 : vector<1x256xi1> to vector<1x256xi32>
    %29 = arith.sitofp %28 : vector<1x256xi32> to vector<1x256xf32>
    %30 = arith.extui %26 : vector<1x256xi1> to vector<1x256xi32>
    %31 = arith.sitofp %30 : vector<1x256xi32> to vector<1x256xf32>
    %32 = arith.sitofp %4 : vector<1x256xi32> to vector<1x256xf32>
    %c0_20 = arith.constant 0 : index
    %c0_21 = arith.constant 0 : index
    %c0_22 = arith.constant 0 : index
    %c0_23 = arith.constant 0 : index
    %33 = vector.load %arg5[%c0_20, %c0_21, %c0_22, %c0_23] : memref<1x1x8x128xf32, #tpu.memory_space<vmem>>, vector<1x1x1x1xf32>
    %34 = vector.shape_cast %33 : vector<1x1x1x1xf32> to vector<1x1xf32>
    %35 = arith.mulf %29, %24 : vector<1x256xf32>
    %36 = arith.mulf %35, %32 : vector<1x256xf32>
    %cst_24 = arith.constant dense<0.000000e+00> : vector<1xf32>
    %37 = vector.multi_reduction <add>, %36, %cst_24 [1] : vector<1x256xf32> to vector<1xf32>
    %38 = vector.shape_cast %37 : vector<1xf32> to vector<1x1xf32>
    %cst_25 = arith.constant dense<0.000000e+00> : vector<1xf32>
    %39 = vector.multi_reduction <add>, %38, %cst_25 [0] : vector<1x1xf32> to vector<1xf32>
    %40 = vector.shape_cast %39 : vector<1xf32> to vector<1x1xf32>
    %41 = arith.addf %34, %40 : vector<1x1xf32>
    %c0_26 = arith.constant 0 : index
    %c0_27 = arith.constant 0 : index
    %c0_28 = arith.constant 0 : index
    %c0_29 = arith.constant 0 : index
    %42 = vector.load %arg5[%c0_26, %c0_27, %c0_28, %c0_29] : memref<1x1x8x128xf32, #tpu.memory_space<vmem>>, vector<1x1x1x1xf32>
    %43 = vector.shape_cast %42 : vector<1x1x1x1xf32> to vector<1x1xf32>
    %44 = vector.shape_cast %41 : vector<1x1xf32> to vector<1x1x1x1xf32>
    tpu.vector_store %arg5[%c0_26, %c0_27, %c0_28, %c0_29], %44 {strides = array<i32>} : memref<1x1x8x128xf32, #tpu.memory_space<vmem>>, vector<1x1x1x1xf32>,
    %c0_30 = arith.constant 0 : index
    %c0_31 = arith.constant 0 : index
    %c0_32 = arith.constant 0 : index
    %c1_33 = arith.constant 1 : index
    %45 = vector.load %arg5[%c0_30, %c0_31, %c0_32, %c1_33] : memref<1x1x8x128xf32, #tpu.memory_space<vmem>>, vector<1x1x1x1xf32>
    %46 = vector.shape_cast %45 : vector<1x1x1x1xf32> to vector<1x1xf32>
    %47 = arith.addf %24, %32 : vector<1x256xf32>
    %48 = arith.mulf %29, %47 : vector<1x256xf32>
    %cst_34 = arith.constant dense<0.000000e+00> : vector<1xf32>
    %49 = vector.multi_reduction <add>, %48, %cst_34 [1] : vector<1x256xf32> to vector<1xf32>
    %50 = vector.shape_cast %49 : vector<1xf32> to vector<1x1xf32>
    %cst_35 = arith.constant dense<0.000000e+00> : vector<1xf32>
    %51 = vector.multi_reduction <add>, %50, %cst_35 [0] : vector<1x1xf32> to vector<1xf32>
    %52 = vector.shape_cast %51 : vector<1xf32> to vector<1x1xf32>
    %53 = arith.addf %46, %52 : vector<1x1xf32>
    %c0_36 = arith.constant 0 : index
    %c0_37 = arith.constant 0 : index
    %c0_38 = arith.constant 0 : index
    %c1_39 = arith.constant 1 : index
    %54 = vector.load %arg5[%c0_36, %c0_37, %c0_38, %c1_39] : memref<1x1x8x128xf32, #tpu.memory_space<vmem>>, vector<1x1x1x1xf32>
    %55 = vector.shape_cast %54 : vector<1x1x1x1xf32> to vector<1x1xf32>
    %56 = vector.shape_cast %53 : vector<1x1xf32> to vector<1x1x1x1xf32>
    tpu.vector_store %arg5[%c0_36, %c0_37, %c0_38, %c1_39], %56 {strides = array<i32>} : memref<1x1x8x128xf32, #tpu.memory_space<vmem>>, vector<1x1x1x1xf32>,
    %c0_40 = arith.constant 0 : index
    %c0_41 = arith.constant 0 : index
    %c0_42 = arith.constant 0 : index
    %c2_43 = arith.constant 2 : index
    %57 = vector.load %arg5[%c0_40, %c0_41, %c0_42, %c2_43] : memref<1x1x8x128xf32, #tpu.memory_space<vmem>>, vector<1x1x1x1xf32>
    %58 = vector.shape_cast %57 : vector<1x1x1x1xf32> to vector<1x1xf32>
    %59 = arith.mulf %31, %24 : vector<1x256xf32>
    %cst_44 = arith.constant dense<0.000000e+00> : vector<1xf32>
    %60 = vector.multi_reduction <add>, %59, %cst_44 [1] : vector<1x256xf32> to vector<1xf32>
    %61 = vector.shape_cast %60 : vector<1xf32> to vector<1x1xf32>
    %cst_45 = arith.constant dense<0.000000e+00> : vector<1xf32>
    %62 = vector.multi_reduction <add>, %61, %cst_45 [0] : vector<1x1xf32> to vector<1xf32>
    %63 = vector.shape_cast %62 : vector<1xf32> to vector<1x1xf32>
    %64 = arith.addf %58, %63 : vector<1x1xf32>
    %c0_46 = arith.constant 0 : index
    %c0_47 = arith.constant 0 : index
    %c0_48 = arith.constant 0 : index
    %c2_49 = arith.constant 2 : index
    %65 = vector.load %arg5[%c0_46, %c0_47, %c0_48, %c2_49] : memref<1x1x8x128xf32, #tpu.memory_space<vmem>>, vector<1x1x1x1xf32>
    %66 = vector.shape_cast %65 : vector<1x1x1x1xf32> to vector<1x1xf32>
    %67 = vector.shape_cast %64 : vector<1x1xf32> to vector<1x1x1x1xf32>
    tpu.vector_store %arg5[%c0_46, %c0_47, %c0_48, %c2_49], %67 {strides = array<i32>} : memref<1x1x8x128xf32, #tpu.memory_space<vmem>>, vector<1x1x1x1xf32>,
    %c0_50 = arith.constant 0 : index
    %c0_51 = arith.constant 0 : index
    %c0_52 = arith.constant 0 : index
    %c3_53 = arith.constant 3 : index
    %68 = vector.load %arg5[%c0_50, %c0_51, %c0_52, %c3_53] : memref<1x1x8x128xf32, #tpu.memory_space<vmem>>, vector<1x1x1x1xf32>
    %69 = vector.shape_cast %68 : vector<1x1x1x1xf32> to vector<1x1xf32>
    %cst_54 = arith.constant dense<0.000000e+00> : vector<1xf32>
    %70 = vector.multi_reduction <add>, %31, %cst_54 [1] : vector<1x256xf32> to vector<1xf32>
    %71 = vector.shape_cast %70 : vector<1xf32> to vector<1x1xf32>
    %cst_55 = arith.constant dense<0.000000e+00> : vector<1xf32>
    %72 = vector.multi_reduction <add>, %71, %cst_55 [0] : vector<1x1xf32> to vector<1xf32>
    %73 = vector.shape_cast %72 : vector<1xf32> to vector<1x1xf32>
    %74 = arith.addf %69, %73 : vector<1x1xf32>
    %c0_56 = arith.constant 0 : index
    %c0_57 = arith.constant 0 : index
    %c0_58 = arith.constant 0 : index
    %c3_59 = arith.constant 3 : index
    %75 = vector.load %arg5[%c0_56, %c0_57, %c0_58, %c3_59] : memref<1x1x8x128xf32, #tpu.memory_space<vmem>>, vector<1x1x1x1xf32>
    %76 = vector.shape_cast %75 : vector<1x1x1x1xf32> to vector<1x1xf32>
    %77 = vector.shape_cast %74 : vector<1x1xf32> to vector<1x1x1x1xf32>
    tpu.vector_store %arg5[%c0_56, %c0_57, %c0_58, %c3_59], %77 {strides = array<i32>} : memref<1x1x8x128xf32, #tpu.memory_space<vmem>>, vector<1x1x1x1xf32>,
    return
  }
  func.func @transform_0(%arg0: i32, %arg1: i32, %arg2: i32) -> (i32, i32, i32, i32) {
    %c0_i32 = arith.constant 0 : i32
    %c0_i32_0 = arith.constant 0 : i32
    %c0_i32_1 = arith.constant 0 : i32
    return %arg0, %c0_i32, %arg2, %c0_i32_0 : i32, i32, i32, i32
  }
  func.func @transform_1(%arg0: i32, %arg1: i32, %arg2: i32) -> (i32, i32, i32) {
    %c0_i32 = arith.constant 0 : i32
    %c0_i32_0 = arith.constant 0 : i32
    return %arg0, %arg2, %c0_i32 : i32, i32, i32
  }
  func.func @transform_2(%arg0: i32, %arg1: i32, %arg2: i32) -> (i32, i32, i32, i32) {
    %c0_i32 = arith.constant 0 : i32
    %c0_i32_0 = arith.constant 0 : i32
    %c0_i32_1 = arith.constant 0 : i32
    return %arg0, %arg1, %c0_i32, %c0_i32_0 : i32, i32, i32, i32
  }
}

</mosaic_0001>

<bundles_post_ra>
// kernel: tpu_custom_call.1
= control target key start
LH: loop header
LB: loop body
LE: loop exit
PB: predicated region body
PF: predicated region fallthrough
CT: control target
= control target key end

     0   :  { %7 = vsyncpa [#allocation3], 0  ;;  %s907_s0 = inlined_call_operand.hbm [shape: f32[2,4,1,256], index: 0, kind: input, shape index: {}]   ;;  %s908_s1 = inlined_call_operand.hbm [shape: s32[2,1,256], index: 1, kind: input, shape index: {}]   ;;  %s909_s2 = inlined_call_operand.hbm [shape: f32[2,1,8,128], index: 2, kind: output, shape index: {}]  }
   0x1   :  { %9 = vsyncpa [#allocation3 + $0x1], 0 }
   0x2   :  { %10 = vsyncpa [#allocation6], 0 }
   0x3   :  { %12 = vsyncpa [#allocation6 + $0x1], 0 }
   0x4   :  { %13 = vsyncpa [#allocation4], 0 }
   0x5   :  { %15 = vsyncpa [#allocation4 + $0x1], 0  ;;  %s733_s9 = smov 0   ;;  %s735_s10 = smov 0  }
   0x6   :  { %s737_s11 = smov 0   ;;  %s739_s12 = smov 0  }
   0x7   :  { %s741_s13 = smov 0   ;;  %s743_s14 = smov 0  }
   0x8 LB: > { %s473_s15 = sadd.s32 4294967295, %s709_s14   ;;  %s474_s16 = sadd.s32 4294967294, %s709_s14   ;;  %s709_s14 = sphi %s743_s14, %s21_s14   ;;  %s705_s13 = sphi %s741_s13, %s921_s13   ;;  %s701_s12 = sphi %s739_s12, %s920_s12   ;;  %s697_s11 = sphi %s737_s11, %s919_s11   ;;  %s693_s10 = sphi %s735_s10, %s918_s10   ;;  %s689_s9 = sphi %s733_s9, %s917_s9  }
   0x9   : > { %s40_s17 = sadd.s32 1, %s705_s13  ;;  %s49_s18 = sadd.s32 1, %s697_s11 }
   0xa   : > { %p42_p0 = scmp.ge.s32.totalorder %s40_s17, 2  ;;  %p56_p1 = scmp.ne.s32.totalorder %s697_s11, %s693_s10 }
   0xb   : > { %p57_p2 = scmp.eq.s32.totalorder %s709_s14, 0  ;;  %p62_p3 = scmp.ne.s32.totalorder %s693_s10, %s689_s9 }
   0xc   : > { %s923_s17 = smov (%p42_p0, %s40_s17), 0  ;;  %p63_p5 = scmp.eq.s32.totalorder %s473_s15, 0 }
   0xd   : > { %p774_p4 = por %p57_p2, %p56_p1  ;;  %s44_s20 = ssub.s32 %s705_s13, %s923_s17 }
   0xe   : > { %p116_p6 = scmp.eq.s32.totalorder %s473_s15, 1  ;;  %p47_p7 = scmp.eq.s32.totalorder %s44_s20, 0 }
   0xf   : > { %p780_p8 = por %p63_p5, %p62_p3  ;;  %p122_p10 = scmp.eq.s32.totalorder %s474_s16, 1 }
  0x10   : > { %p784_p9 = por %p116_p6, %p56_p1  ;;  %p515_p13 = scmp.lt.s32.totalorder %s709_s14, 2 }
  0x11   : > { %s789_s23 = scalar_select %p47_p7, %s697_s11, %s49_s18  }
  0x12   : > { %p791_p11 = por %p122_p10, %p62_p3  ;;  %s798_s25 = sand.u32 1, %s697_s11  }
  0x13   : > { %s477_s26 = sshll.u32 %s798_s25, 3  ;;  %s496_s27 = sshll.u32 %s705_s13, 7 }
  0x14   : > { %s154_s30 = scalar_lea.hbm %s907_s0, %s496_s27  ;;  %s146_s3 = scalar_lea.vmem [#allocation2], %s477_s26 }
  0x15   : > { %s155_s4 = sshll.u32 %s146_s3, 4  ;;  %p807_p0 = pnand %p515_p13, %p774_p4  ;;  %s156_s4 = int_to_ptr.vmem [resolvable:$true] %s155_s4 }
  0x16   : > { %p483_p1 = scmp.ge.s32.totalorder %s709_s14, 1  ;;  %s143_s6 = scalar_lea.sflag [#allocation3], %s798_s25 }
  0x17   : > { %p571_p2 = pneg %p807_p0  ;;  %s582_s7 = scalar_lea.vmem %s156_s4, 128 }
  0x18   : > { %p583_p3 = scmp.ne.s32.totalorder %s156_s4, %s582_s7  ;;  %s711_s8 = smov [#allocation2]  }
  0x19   : > { %s587_s15 = sshll.u32 %s711_s8, 4  ;;  %s588_s15 = int_to_ptr.vmem [resolvable:$false] %s587_s15 }
  0x1a   : > { %p585_p5 = pnand %p583_p3, %p571_p2  ;;  %s589_s16 = scalar_lea.vmem %s588_s15, 256 }
  0x1b   : > { %p590_p4 = scmp.lt.s32.totalorder %s156_s4, %s588_s15  ;;  %p591_p7 = scmp.lt.s32.totalorder %s589_s16, %s582_s7 }
  0x1c   : > { %p586_p6 = pneg %p585_p5 }
  0x1d   : > { %p592_p10 = por %p591_p7, %p590_p4 }
  0x1f   : > { %p593_p13 = pnand %p592_p10, %p586_p6 }
  0x21   : > { %596 = shalt.err (!%p593_p13)
}
  0x22   : > { %s712_s18 = smov 32   ;;  %s713_s19 = smov 2  }
  0x23   : > { %507 = dma.hbm_to_vmem [thread:$0]  (!%p807_p0), %s154_s30, 128, %s156_s4, %s143_s6, %s712_s18, %s712_s18, %s713_s19  }
  0x24   : > { %p184_p3 = scmp.lt.s32.totalorder %s709_s14, 3  ;;  %s480_s20 = sshll.u32 %s798_s25, 1 }
  0x25   : > { %s497_s26 = sshll.u32 %s705_s13, 5  ;;  %s169_s7 = scalar_lea.vmem [#allocation5], %s480_s20 }
  0x26   : > { %p825_p5 = pnand %p483_p1, %p184_p3  ;;  %s177_s3 = scalar_lea.hbm %s908_s1, %s497_s26 }
  0x27   : > { %s179_s8 = sshll.u32 %s169_s7, 4  ;;  %s166_s15 = scalar_lea.sflag [#allocation6], %s798_s25  ;;  %s180_s8 = int_to_ptr.vmem [resolvable:$true] %s179_s8 }
  0x28   : > { %s610_s16 = scalar_lea.vmem %s180_s8, 32  ;;  %s714_s30 = smov [#allocation5]  }
  0x29   : > { %p611_p6 = scmp.ne.s32.totalorder %s180_s8, %s610_s16  ;;  %s615_s4 = sshll.u32 %s714_s30, 4  ;;  %s616_s4 = int_to_ptr.vmem [resolvable:$false] %s615_s4 }
  0x2a   : > { %s617_s6 = scalar_lea.vmem %s616_s4, 64  ;;  %p618_p1 = scmp.lt.s32.totalorder %s180_s8, %s616_s4 }
  0x2b   : > { %p613_p4 = pnand %p611_p6, %p571_p2  ;;  %p619_p10 = scmp.lt.s32.totalorder %s617_s6, %s610_s16 }
  0x2d   : > { %p614_p7 = pneg %p613_p4  ;;  %p620_p13 = por %p619_p10, %p618_p1 }
  0x2f   : > { %p621_p3 = pnand %p620_p13, %p614_p7 }
  0x31   : > { %624 = shalt.err (!%p621_p3)
}
  0x32   : > { %510 = dma.hbm_to_vmem [thread:$0]  (!%p807_p0), %s177_s3, 32, %s180_s8, %s166_s15  }
  0x33   : > { %188 = sbr.rel (%p825_p5) target bundleno = 260 (0x104), region = 28  ;;  %s841_s25 = sand.u32 (!%p825_p5), 1, %s693_s10  }
  0x34   : > { %s484_s18 = sshll.u32 (!%p825_p5), %s841_s25, 3  ;;  %s191_s19 = scalar_lea.sflag (!%p825_p5), [#allocation3], %s841_s25 }
  0x35   : > { %s194_s20 = scalar_lea.vmem (!%p825_p5), [#allocation2], %s484_s18 }
  0x38   : > { %676 = dma.done.wait (%p780_p8), %s191_s19, 128  }
  0x39   : > { %678 = vsyncadd (%p780_p8), %s191_s19, 4294967168  ;;  %s485_s5 = sshll.u32 %s841_s25, 1  ;;  %s200_s26 = scalar_lea.sflag [#allocation6], %s841_s25 }
  0x3a   : > { %s203_s27 = scalar_lea.vmem [#allocation5], %s485_s5 }
  0x3b   : > { %680 = dma.done.wait (%p780_p8), %s200_s26, 32  }
  0x3c   : > { %682 = vsyncadd (%p780_p8), %s200_s26, 4294967264  ;;  %s855_s28 = scalar_lea.vmem [#allocation7], %s484_s18  ;;  %v715_v0 = vmov 0.0   ;;  %v261_v1 = vlaneseq  ;;  %v234_v2 = vld [vmem:[%s203_s27] sm:$0x3]  ;;  %vm716_vm2 = vmmov 1  }
  0x3d   : > { %233 = vst [vmem:[%s855_s28] sm:$0xff] %v715_v0  ;;  %v235_v3 = vld [vmem:[%s194_s20] sm:$0x3]  ;;  %v487_v4 = vld [vmem:[%s194_s20 + $0x2] sm:$0x3]  ;;  %v488_v5 = vld [vmem:[%s194_s20 + $0x4] sm:$0x3]  ;;  %v256_v14 = vcvt.s32.f32 %v234_v2 }
  0x3e   : > { %vm238_vm0 = vcmp.gt.f32.partialorder %v487_v4, %v235_v3  ;;  %vm250_vm1 = vcmp.eq.s32.totalorder %v234_v2, 30  ;;  %v489_v8 = vld [vmem:[%s194_s20 + $0x6] sm:$0x3]  ;;  %v262_v9 = vshrl.u32 %v261_v1, 7  ;;  %vm271_vm6 = vcmask 1040384   ;;  %s493_s21 = sshll.u32 %s701_s12, 7 }
  0x3f   : > { %v239_v6 = vsel %vm238_vm0, %v487_v4, %v235_v3  ;;  %v240_v7 = vsel %vm238_vm0, 1.0, %v715_v0  ;;  %vm251_vm3 = vmxor %vm250_vm1, %vm716_vm2  ;;  %v491_v13 = vsel %vm250_vm1, 1.0, %v715_v0  ;;  %vm279_vm7 = vcmask 0   ;;  %s362_s29 = sshll.u32 %s855_s28, 4  ;;  %s360_s8 = scalar_lea.hbm %s909_s2, %s493_s21  ;;  %s363_s29 = int_to_ptr.vmem [resolvable:$true] %s362_s29 }
  0x40   : > { %vm243_vm4 = vcmp.gt.f32.partialorder %v488_v5, %v239_v6  ;;  %v490_v12 = vsel %vm251_vm3, 1.0, %v715_v0  ;;  %v263_v16 = vsub.s32 0, %v262_v9  ;;  %v267_v17 = vsub.s32 1, %v262_v9  ;;  %s348_s15 = scalar_lea.sflag [#allocation4], %s841_s25  ;;  %s625_s16 = scalar_lea.vmem %s363_s29, 128 }
  0x41   : > { %v244_v10 = vsel %vm243_vm4, %v488_v5, %v239_v6  ;;  %v245_v11 = vsel %vm243_vm4, 2.0, %v240_v7  ;;  %vm302_vm8 = vcmask 8200   ;;  %vm324_vm9 = vcmask 16400   ;;  %p626_p8 = scmp.ne.s32.totalorder %s363_s29, %s625_s16  ;;  %s717_s30 = smov [#allocation7]  }
  0x42   : > { %vm248_vm5 = vcmp.gt.f32.partialorder %v489_v8, %v244_v10  ;;  %v331_v21 = vrot.slane %v491_v13, %v263_v16  ;;  %v335_v22 = vrot.slane %v491_v13, %v267_v17  ;;  %vm345_vm10 = vcmask 24600   ;;  %s629_s4 = sshll.u32 %s717_s30, 4  ;;  %s630_s4 = int_to_ptr.vmem [resolvable:$false] %s629_s4 }
  0x43   : > { %v249_v15 = vsel %vm248_vm5, 3.0, %v245_v11  ;;  %p627_p0 = pnand %p626_p8, %p784_p9  ;;  %s631_s12 = scalar_lea.vmem %s630_s4, 256 }
  0x44   : > { %v258_v18 = vmul.f32 %v490_v12, %v249_v15  ;;  %v282_v19 = vadd.f32 %v256_v14, %v249_v15  ;;  %v305_v20 = vmul.f32 %v491_v13, %v249_v15  ;;  %v338_v33 = vsel %vm271_vm6, %v331_v21, 0.0  ;;  %v257_v43 = vld [vmem:[%s855_s28] sm:$0x1]  ;;  %p632_p5 = scmp.lt.s32.totalorder %s363_s29, %s630_s4  ;;  %p633_p6 = scmp.lt.s32.totalorder %s631_s12, %s625_s16 }
  0x45   : > { %v339_v34 = vsel %vm271_vm6, %v335_v22, 0.0  ;;  %p628_p2 = pneg %p627_p0 }
  0x46   : > { %v259_v23 = vmul.f32 %v258_v18, %v256_v14  ;;  %v283_v24 = vmul.f32 %v490_v12, %v282_v19  ;;  %v310_v25 = vrot.slane %v305_v20, %v263_v16  ;;  %v314_v26 = vrot.slane %v305_v20, %v267_v17  ;;  %p634_p4 = por %p633_p6, %p632_p5 }
  0x47   : > { %v340_v42 = vadd.f32 %v339_v34, %v338_v33 }
  0x48   : > { %v264_v27 = vrot.slane %v259_v23, %v263_v16  ;;  %v268_v28 = vrot.slane %v259_v23, %v267_v17  ;;  %v288_v29 = vrot.slane %v283_v24, %v263_v16  ;;  %v292_v30 = vrot.slane %v283_v24, %v267_v17  ;;  %p635_p7 = pnand %p634_p4, %p628_p2 }
  0x49   : > { %v317_v31 = vsel %vm271_vm6, %v310_v25, 0.0  ;;  %v318_v32 = vsel %vm271_vm6, %v314_v26, 0.0 }
  0x4a   : > { %v272_v35 = vsel %vm271_vm6, %v264_v27, 0.0  ;;  %v273_v36 = vsel %vm271_vm6, %v268_v28, 0.0  ;;  %v295_v37 = vsel %vm271_vm6, %v288_v29, 0.0  ;;  %v296_v38 = vsel %vm271_vm6, %v292_v30, 0.0 }
  0x4b   : > { %v274_v39 = vadd.f32 %v273_v36, %v272_v35  ;;  %v319_v40 = vadd.f32 %v318_v32, %v317_v31  ;;  %v297_v41 = vadd.f32 %v296_v38, %v295_v37 }
  0x4d   : > { %275 = vadd.xlane.f32.xlu0 %v274_v39  ;;  %320 = vadd.xlane.f32.xlu1 %v319_v40 }
  0x51   : > { %298 = vadd.xlane.f32.xlu0 %v297_v41  ;;  %341 = vadd.xlane.f32.xlu1 %v340_v42 }
  0xd6   : > { %v276_v44 = vpop.xlane.xlu0 %275  ;;  %v321_v49 = vpop.xlane.xlu1 %320 }
  0xd7   : > { %v278_v45 = vadd.f32 %v276_v44, %v257_v43 }
  0xd9   : > { %280 = vst.msk [vmem:[%s855_s28] sm:$0x1] %vm279_vm7, %v278_v45 }
  0xda   : > { %v299_v46 = vpop.xlane.xlu0 %298  ;;  %v342_v52 = vpop.xlane.xlu1 %341 }
  0xe0   : > { %v281_v47 = vld [vmem:[%s855_s28] sm:$0x1] }
  0xe1   : > { %v301_v48 = vadd.f32 %v299_v46, %v281_v47 }
  0xe3   : > { %303 = vst.msk [vmem:[%s855_s28] sm:$0x1] %vm302_vm8, %v301_v48 }
  0xea   : > { %v304_v50 = vld [vmem:[%s855_s28] sm:$0x1] }
  0xeb   : > { %v323_v51 = vadd.f32 %v321_v49, %v304_v50 }
  0xed   : > { %325 = vst.msk [vmem:[%s855_s28] sm:$0x1] %vm324_vm9, %v323_v51 }
  0xf4   : > { %v326_v53 = vld [vmem:[%s855_s28] sm:$0x1] }
  0xf5   : > { %v344_v54 = vadd.f32 %v342_v52, %v326_v53 }
  0xf7   : > { %346 = vst.msk [vmem:[%s855_s28] sm:$0x1] %vm345_vm10, %v344_v54 }
  0xf8   : > { %638 = shalt.err (!%p635_p7)
}
  0xf9   : > { %s639_s6 = scalar_lea.hbm %s360_s8, 128  ;;  %s643_s19 = scalar_lea.hbm %s909_s2, 256 }
  0xfa   : > { %p640_p1 = scmp.ne.s32.totalorder %s360_s8, %s639_s6  ;;  %p644_p3 = scmp.lt.s32.totalorder %s360_s8, %s909_s2 }
  0xfb   : > { %p645_p8 = scmp.lt.s32.totalorder %s643_s19, %s639_s6 }
  0xfc   : > { %p641_p10 = pnand %p640_p1, %p784_p9 }
  0xfd   : > { %p646_p0 = por %p645_p8, %p644_p3 }
  0xfe   : > { %p642_p13 = pneg %p641_p10 }
 0x100   : > { %p647_p12 = pnand %p646_p0, %p642_p13 }
 0x102   : > { %650 = shalt.err (!%p647_p12)
}
 0x103   : > { %502 = dma.vmem_to_hbm [thread:$0]  (%p784_p9), %s363_s29, 128, %s360_s8, %s348_s15  }
 0x104 PF: > { %s374_s26 = sand.u32 1, %s689_s9   ;;  %p916_p2 = scmp.ge.s32.totalorder %s709_s14, 2 }
 0x105   : > { %s375_s27 = scalar_lea.sflag [#allocation4], %s374_s26 }
 0x106   : > { %p512_p5 = pnand %p916_p2, %p791_p11 }
 0x108   : > { %p513_p6 = pneg %p512_p5 }
 0x10a   : > { %684 = dma.done.wait (%p513_p6), %s375_s27, 128  }
 0x10b   : > { %686 = vsyncadd (%p513_p6), %s375_s27, 4294967168  ;;  %s21_s14 = sadd.s32 1, %s709_s14   ;;  %s917_s9 = smov %s693_s10 }
 0x10c   : > { %p18_p4 = scmp.ge.s32.totalorder %s21_s14, 4   ;;  %s918_s10 = smov %s697_s11 }
 0x10d   : > { %s919_s11 = smov %s789_s23  ;;  %s920_s12 = smov %s705_s13 }
 0x10e   : > { %s921_s13 = smov %s923_s17  ;;  %20 = sbr.rel (!%p18_p4) target bundleno = 8 (0x8), region = 93 }
 0x113   :  { %380 = vsyncpa [#allocation3], 1 }
 0x114   :  { %382 = vsyncpa [#allocation3 + $0x1], 1 }
 0x115   :  { %383 = vsyncpa [#allocation6], 1 }
 0x116   :  { %385 = vsyncpa [#allocation6 + $0x1], 1 }
 0x117   :  { %386 = vsyncpa [#allocation4], 1 }
 0x118   :  { %388 = vsyncpa [#allocation4 + $0x1], 1 }

</bundles_post_ra>
